<compile_context>
chip_gen: v7x
topology: tpu7x:2x2x1
jax: 0.10.0
libtpu: 0.0.40
codegen_flags: <defaults>
</compile_context>

<pallas_src>
import numpy as np
import jax
import jax.numpy as jnp
from jax.experimental import pallas as pl
from jax.experimental.pallas import tpu as pltpu

LAND_COVER_INTRA_DISTANCES = [0, 0, 1, 2, 3, 0, 1, 2, 3, 0, 1, 2, 3, 4, 0, 1, 2, 3, 0, 0, 0, 1, 2]


def _level0_codes(dists):
    # Synthetic level-0 (major class) codes: every run of intra-distances that
    # restarts at 0 begins a new major class (mirrors get_land_cover_column).
    codes, cur = [], -1
    for d in dists:
        if d == 0:
            cur += 1
        codes.append(cur)
    return codes


LEVEL0_CODES = _level0_codes(LAND_COVER_INTRA_DISTANCES)   # 23 entries
N_CLASSES = len(LEVEL0_CODES)                              # 23
N_MAJOR = len(set(LEVEL0_CODES))                           # 8


def land_cover_kernel(x_ref, m_ref, o_ref):
    """One (batch*time, spatial-tile) step of the folded float path.

    x_ref : (1, C, thw)  class probabilities; spatial positions in the lane dim
    m_ref : (C, E)       folded matrix  bias[codes] + dist * weights[codes]
    o_ref : (1, thw, E)
    """
    x = x_ref[0]                       # (C, thw)  lane-dense load
    m = m_ref[...]                     # (C, E)    grid-invariant constant
    # Single MXU contraction over the class axis C (transposed-lhs form).
    out = jax.lax.dot_general(
        x, m, (((0,), (0,)), ((), ())),
        preferred_element_type=jnp.float32)          # (thw, E)
    o_ref[0] = out.astype(o_ref.dtype)


def land_cover_embedding(x, weights, bias, *, max_tile=2048):
    """x: (B, T, C=23, H, W) float probabilities.  Returns (B, T, H, W, E).

    max_tile: spatial tile (lanes) per grid step.  2048 is safe on every
    generation (v7x has only 64 MiB VMEM); on v5e/v6e it can be raised to
    4096-8192 for slightly less per-step overhead.
    """
    B, T, C, H, W = x.shape
    assert C == N_CLASSES
    E = weights.shape[1]
    BT = B * T
    HW = H * W

    # Fold the whole float path into one (C, E) matrix in the wrapper so the
    # kernel does a single matmul per tile (removes 3 of 4 per-step MXU pushes
    # and 3 constant inputs).
    codes = jnp.asarray(LEVEL0_CODES, jnp.int32)
    dist = jnp.asarray(LAND_COVER_INTRA_DISTANCES, jnp.float32)
    m_combined = (bias[codes].astype(jnp.float32)
                  + dist[:, None] * weights[codes].astype(jnp.float32)
                  ).astype(x.dtype)                                   # (C, E)

    # Free reshape of the contiguous input -- no transpose, no extra HBM pass.
    x3d = x.reshape(BT, C, HW)

    # Spatial tile: either the whole H*W plane (always a legal block since it
    # equals the full dim) or a large multiple of 128; the last (partial) tile
    # is masked by Pallas, so no divisibility assert / padding is needed.
    if HW <= max_tile:
        thw = HW
    else:
        thw = (max_tile // 128) * 128
    n_s = pl.cdiv(HW, thw)

    out3d = pl.pallas_call(
        land_cover_kernel,
        out_shape=jax.ShapeDtypeStruct((BT, HW, E), x.dtype),
        grid_spec=pltpu.PrefetchScalarGridSpec(
            num_scalar_prefetch=0,
            grid=(BT, n_s),
            in_specs=[
                pl.BlockSpec((1, C, thw), lambda bt, s: (bt, 0, s)),
                pl.BlockSpec((C, E), lambda bt, s: (0, 0)),
            ],
            out_specs=pl.BlockSpec((1, thw, E), lambda bt, s: (bt, s, 0)),
        ),
        compiler_params=pltpu.CompilerParams(
            dimension_semantics=("parallel", "parallel")),
    )(x3d, m_combined)

    # (BT, HW, E) -> (B, T, H, W, E) is a free reshape (row-major layout match).
    return out3d.reshape(B, T, H, W, E)


# TODO(synk): integer (class-index) input path of forward() is a pure embedding
# gather (F.embedding + distance gather); not implemented as a Pallas kernel here.


def _reference(x, weights, bias):
    # Pure-JAX transcription of the (un-folded) PyTorch float path, used to
    # verify that folding the four matmuls into one matrix is numerically safe.
    codes = jnp.asarray(LEVEL0_CODES, jnp.int32)
    onehot = jax.nn.one_hot(codes, N_MAJOR, dtype=x.dtype)
    dist = jnp.asarray(LAND_COVER_INTRA_DISTANCES, x.dtype)
    level0 = jnp.einsum('btchw,cm->btmhw', x, onehot)              # scatter_add_
    level0_bias = jnp.einsum('btmhw,me->bthwe', level0, bias)
    all_weights = dist[:, None] * weights[codes]                   # (C, E)
    return level0_bias + jnp.einsum('btchw,ce->bthwe', x, all_weights)


if __name__ == "__main__":
    B, T, H, W, E = 2, 2, 16, 16, 32
    key = jax.random.PRNGKey(0)
    kx, kw, kb = jax.random.split(key, 3)

    # Probability distribution over the 23 LCNS classes (float path of forward()).
    logits = jax.random.normal(kx, (B, T, N_CLASSES, H, W), dtype=jnp.float32)
    x = jax.nn.softmax(logits, axis=2)

    # reset_parameters(): weights ~ Normal(0, 1), bias = 0.0.  We use a small
    # nonzero bias here so the folded bias path is actually exercised.
    weights = jax.random.normal(kw, (N_MAJOR, E), dtype=jnp.float32)
    bias = 0.1 * jax.random.normal(kb, (N_MAJOR, E), dtype=jnp.float32)

    out = land_cover_embedding(x, weights, bias)
    out = jax.block_until_ready(out)

    ref = _reference(x, weights, bias)
    assert out.shape == (B, T, H, W, E)
    np.testing.assert_allclose(np.asarray(out), np.asarray(ref), rtol=1e-5, atol=1e-5)

    print("KERNEL_OK")
</pallas_src>

<mosaic_0001>
module attributes {stable_mosaic.version = 11 : i64} {
  func.func @land_cover_kernel(%arg0: i32, %arg1: i32, %arg2: memref<1x23x256xf32, #tpu.memory_space<vmem>>, %arg3: memref<23x32xf32, #tpu.memory_space<vmem>>, %arg4: memref<1x256x32xf32, #tpu.memory_space<vmem>>) attributes {dimension_semantics = [#tpu.dimension_semantics<parallel>, #tpu.dimension_semantics<parallel>], iteration_bounds = array<i64: 4, 1>, scalar_prefetch = 0 : i64, scratch_operands = 0 : i64, tpu.core_type = #tpu.core_type<tc>, window_params = [{transform_indices = @transform_0, window_bounds = array<i64: 1, 23, 256>}, {pipeline_mode = #tpu.pipeline_mode<synchronous>, transform_indices = @transform_1, window_bounds = array<i64: 23, 32>}, {transform_indices = @transform_2, window_bounds = array<i64: 1, 256, 32>}]} {
    %c0 = arith.constant 0 : index
    %c0_0 = arith.constant 0 : index
    %c0_1 = arith.constant 0 : index
    %0 = vector.load %arg2[%c0, %c0_0, %c0_1] : memref<1x23x256xf32, #tpu.memory_space<vmem>>, vector<1x23x256xf32>
    %1 = vector.shape_cast %0 : vector<1x23x256xf32> to vector<23x256xf32>
    %c0_2 = arith.constant 0 : index
    %c0_3 = arith.constant 0 : index
    %2 = vector.load %arg3[%c0_2, %c0_3] : memref<23x32xf32, #tpu.memory_space<vmem>>, vector<23x32xf32>
    %cst = arith.constant dense<0.000000e+00> : vector<256x32xf32>
    %3 = tpu.matmul %1, %2, %cst {dimension_numbers = #tpu.dot_dimension_numbers<[0], [0], [1], [1], [0, 1, 1, 1], [], []>} : vector<23x256xf32>, vector<23x32xf32>, vector<256x32xf32> -> vector<256x32xf32>
    %c0_4 = arith.constant 0 : index
    %c0_5 = arith.constant 0 : index
    %c0_6 = arith.constant 0 : index
    %4 = vector.load %arg4[%c0_4, %c0_5, %c0_6] : memref<1x256x32xf32, #tpu.memory_space<vmem>>, vector<1x256x32xf32>
    %5 = vector.shape_cast %4 : vector<1x256x32xf32> to vector<256x32xf32>
    %6 = vector.shape_cast %3 : vector<256x32xf32> to vector<1x256x32xf32>
    tpu.vector_store %arg4[%c0_4, %c0_5, %c0_6], %6 {strides = array<i32>} : memref<1x256x32xf32, #tpu.memory_space<vmem>>, vector<1x256x32xf32>,
    return
  }
  func.func @transform_0(%arg0: i32, %arg1: i32) -> (i32, i32, i32) {
    %c0_i32 = arith.constant 0 : i32
    %c0_i32_0 = arith.constant 0 : i32
    return %arg0, %c0_i32, %arg1 : i32, i32, i32
  }
  func.func @transform_1(%arg0: i32, %arg1: i32) -> (i32, i32) {
    %c0_i32 = arith.constant 0 : i32
    %c0_i32_0 = arith.constant 0 : i32
    %c0_i32_1 = arith.constant 0 : i32
    return %c0_i32, %c0_i32_0 : i32, i32
  }
  func.func @transform_2(%arg0: i32, %arg1: i32) -> (i32, i32, i32) {
    %c0_i32 = arith.constant 0 : i32
    %c0_i32_0 = arith.constant 0 : i32
    return %arg0, %arg1, %c0_i32 : i32, i32, i32
  }
}

</mosaic_0001>

<bundles_post_ra>
// kernel: tpu_custom_call.1
= control target key start
LH: loop header
LB: loop body
LE: loop exit
PB: predicated region body
PF: predicated region fallthrough
CT: control target
= control target key end

     0   :  { %s908_s9 = smov 0   ;;  %s910_s10 = smov 0   ;;  %s1052_s0 = inlined_call_operand.vmem [shape: f32[4,23,256], index: 0, kind: input, shape index: {}]   ;;  %s1053_s1 = inlined_call_operand.vmem [shape: f32[23,32], index: 1, kind: input, shape index: {}]   ;;  %s1054_s2 = inlined_call_operand.vmem [shape: f32[4,256,32], index: 2, kind: output, shape index: {}]  }
   0x1   :  { %s912_s11 = smov 0  }
   0x2 LB: > { %s24_s12 = sadd.s32 1, %s887_s10  ;;  %p706_p0 = scmp.ge.s32.totalorder %s891_s11, 1  ;;  %s891_s11 = sphi %s912_s11, %s12_s11   ;;  %s887_s10 = sphi %s910_s10, %s1056_s10   ;;  %s883_s9 = sphi %s908_s9, %s1055_s9  }
   0x3   : > { %p26_p1 = scmp.ge.s32.totalorder %s24_s12, 4  ;;  %p133_p2 = scmp.lt.s32.totalorder %s891_s11, 5 }
   0x5   : > { %s1058_s12 = smov (%p26_p1, %s24_s12), 0  ;;  %p134_p3 = pnand %p706_p0, %p133_p2 }
   0x6   : > { %p164_p4 = scmp.lt.s32.totalorder (!%p134_p3), %s883_s9, 3  ;;  %v189_v0 = vld [vmem:[%s1053_s1] sm:$0xff] (!%p134_p3)  ;;  %v190_v1 = vld [vmem:[%s1053_s1 + $0x8] sm:$0xff] (!%p134_p3)  ;;  %v191_v7 = vld [vmem:[%s1053_s1 + $0x10] sm:$0x7f] (!%p134_p3)  ;;  %vm353_vm0 = vcmask (!%p134_p3), 1046528  }
   0x7   : > { %137 = sbr.rel (%p134_p3) target bundleno = 422 (0x1a6), region = 28  ;;  %v835_v2 = vpack.c.bf16 (!%p134_p3), %v190_v1, %v189_v0  ;;  %vm256_vm1 = vcmask (!%p134_p3), 187392   ;;  %vm582_vm2 = vcmask (!%p134_p3), 261120  }
   0x9   : > { %836 = vmatprep.subr.bf16.mxu0 (!%p134_p3), %v835_v2  ;;  %839 = vmatprep.subr.bf16.mxu1 (!%p134_p3), %v835_v2 }
   0xa   : > { %838 = vmatpush3.bf16.msra.mxu0 (!%p134_p3), %v835_v2  ;;  %841 = vmatpush3.bf16.msra.mxu1 (!%p134_p3), %v835_v2 }
   0xb   : > { %785 = vmatprep.subr.msk.mxu0 (!%p134_p3), %vm353_vm0, %v191_v7  ;;  %840 = vmatprep.subr.msk.mxu1 (!%p134_p3), %vm353_vm0, %v191_v7 }
   0xe   : > { %s1060_s9 = smov (!%p164_p4, %s883_s9), 3  ;;  %786 = vmatpush3.msk.msra.mxu0 %vm353_vm0, %v191_v7  ;;  %842 = vmatpush3.msk.msra.mxu1 %vm353_vm0, %v191_v7 }
   0xf   : > { %s843_s17 = smul.u32 48, %s1060_s9  ;;  %s745_s23 = sshll.u32 %s1060_s9, 8 }
  0x10   : > { %s977_s26 = scalar_lea.vmem %s1054_s2, %s745_s23 }
  0x11   : > { %s171_s20 = scalar_lea.vmem %s1052_s0, %s843_s17 }
  0x12   : > { %v184_v3 = vld [vmem:[%s171_s20 + $0x8] sm:$0xff]  ;;  %v183_v4 = vld [vmem:[%s171_s20] sm:$0xff]  ;;  %v186_v5 = vld [vmem:[%s171_s20 + $0x18] sm:$0xff] }
  0x13   : > { %224 = vxpose.xlu1.b32.start [1/3] (short) %v184_v3, 128  ;;  %192 = vxpose.xlu0.b32.start [1/3] (short) %v183_v4, 128  ;;  %v185_v6 = vld [vmem:[%s171_s20 + $0x10] sm:$0xff]  ;;  %v188_v8 = vld [vmem:[%s171_s20 + $0x28] sm:$0x7f]  ;;  %v187_v9 = vld [vmem:[%s171_s20 + $0x20] sm:$0x7f] }
  0x17   : > { %225 = vxpose.xlu1.b32.cont [2/3] (short) %v186_v5, 128  ;;  %193 = vxpose.xlu0.b32.cont [2/3] (short) %v185_v6, 128 }
  0x1b   : > { %226 = vxpose.xlu1.b32.end [3/3] (short) %v188_v8, 128  ;;  %194 = vxpose.xlu0.b32.end [3/3] (short) %v187_v9, 128 }
  0x93   : > { %v240_v10 = vpop.trf.xlu1  ;;  %v208_v11 = vpop.trf.xlu0 }
  0x94   : > { %787 = vmatprep.mubr.msk.f32.mxu0 %vm256_vm1, %v208_v11  ;;  %811 = vmatprep.mubr.msk.f32.mxu1 %vm256_vm1, %v240_v10 }
  0x97   : > { %v241_v12 = vpop.trf.xlu1  ;;  %v209_v13 = vpop.trf.xlu0 }
  0x98   : > { %788 = vmatmul.mubr.msk.f32.vlgmr.msra.gmra.mrb[0].mxu0 %vm256_vm1, %v209_v13  ;;  %812 = vmatmul.mubr.msk.f32.vlgmr.msra.gmra.mrb[0].mxu1 %vm256_vm1, %v241_v12 }
  0x9b   : > { %v242_v14 = vpop.trf.xlu1  ;;  %v210_v15 = vpop.trf.xlu0 }
  0x9c   : > { %790 = vmatprep.mubr.msk.f32.mxu0 %vm256_vm1, %v210_v15  ;;  %814 = vmatprep.mubr.msk.f32.mxu1 %vm256_vm1, %v242_v14 }
  0x9f   : > { %v243_v16 = vpop.trf.xlu1  ;;  %v211_v17 = vpop.trf.xlu0 }
  0xa0   : > { %791 = vmatmul.mubr.msk.f32.gmra.mrb[2].mxu0 %vm256_vm1, %v211_v17  ;;  %815 = vmatmul.mubr.msk.f32.gmra.mrb[2].mxu1 %vm256_vm1, %v243_v16 }
  0xa3   : > { %v244_v18 = vpop.trf.xlu1  ;;  %v212_v19 = vpop.trf.xlu0 }
  0xa4   : > { %793 = vmatprep.mubr.msk.f32.mxu0 %vm256_vm1, %v212_v19  ;;  %817 = vmatprep.mubr.msk.f32.mxu1 %vm256_vm1, %v244_v18 }
  0xa7   : > { %v245_v20 = vpop.trf.xlu1  ;;  %v213_v21 = vpop.trf.xlu0 }
  0xa8   : > { %794 = vmatmul.mubr.msk.f32.gmra.mrb[4].mxu0 %vm256_vm1, %v213_v21  ;;  %818 = vmatmul.mubr.msk.f32.gmra.mrb[4].mxu1 %vm256_vm1, %v245_v20 }
  0xab   : > { %v246_v22 = vpop.trf.xlu1  ;;  %v214_v23 = vpop.trf.xlu0 }
  0xac   : > { %796 = vmatprep.mubr.msk.f32.mxu0 %vm256_vm1, %v214_v23  ;;  %820 = vmatprep.mubr.msk.f32.mxu1 %vm256_vm1, %v246_v22 }
  0xaf   : > { %v247_v24 = vpop.trf.xlu1  ;;  %v215_v25 = vpop.trf.xlu0 }
  0xb0   : > { %797 = vmatmul.mubr.msk.f32.gmra.mrb[6].mxu0 %vm256_vm1, %v215_v25  ;;  %821 = vmatmul.mubr.msk.f32.gmra.mrb[6].mxu1 %vm256_vm1, %v247_v24 }
  0xb3   : > { %v248_v26 = vpop.trf.xlu1  ;;  %v216_v27 = vpop.trf.xlu0 }
  0xb4   : > { %799 = vmatprep.mubr.msk.f32.mxu0 %vm256_vm1, %v216_v27  ;;  %823 = vmatprep.mubr.msk.f32.mxu1 %vm256_vm1, %v248_v26 }
  0xb7   : > { %v249_v28 = vpop.trf.xlu1  ;;  %v217_v29 = vpop.trf.xlu0 }
  0xb8   : > { %800 = vmatmul.mubr.msk.f32.gmra.mrb[8].mxu0 %vm256_vm1, %v217_v29  ;;  %824 = vmatmul.mubr.msk.f32.gmra.mrb[8].mxu1 %vm256_vm1, %v249_v28 }
  0xbb   : > { %v250_v30 = vpop.trf.xlu1  ;;  %v218_v31 = vpop.trf.xlu0 }
  0xbc   : > { %802 = vmatprep.mubr.msk.f32.mxu0 %vm256_vm1, %v218_v31  ;;  %826 = vmatprep.mubr.msk.f32.mxu1 %vm256_vm1, %v250_v30 }
  0xbf   : > { %v251_v32 = vpop.trf.xlu1  ;;  %v219_v33 = vpop.trf.xlu0 }
  0xc0   : > { %803 = vmatmul.mubr.msk.f32.gmra.mrb[10].mxu0 %vm256_vm1, %v219_v33  ;;  %827 = vmatmul.mubr.msk.f32.gmra.mrb[10].mxu1 %vm256_vm1, %v251_v32 }
  0xc3   : > { %v252_v34 = vpop.trf.xlu1  ;;  %v220_v35 = vpop.trf.xlu0 }
  0xc4   : > { %805 = vmatprep.mubr.msk.f32.mxu0 %vm256_vm1, %v220_v35  ;;  %829 = vmatprep.mubr.msk.f32.mxu1 %vm256_vm1, %v252_v34 }
  0xc7   : > { %v253_v36 = vpop.trf.xlu1  ;;  %v221_v37 = vpop.trf.xlu0 }
  0xc8   : > { %806 = vmatmul.mubr.msk.f32.gmra.mrb[12].mxu0 %vm256_vm1, %v221_v37  ;;  %830 = vmatmul.mubr.msk.f32.gmra.mrb[12].mxu1 %vm256_vm1, %v253_v36 }
  0xcb   : > { %v254_v38 = vpop.trf.xlu1  ;;  %v222_v39 = vpop.trf.xlu0 }
  0xcc   : > { %808 = vmatprep.mubr.msk.f32.mxu0 %vm256_vm1, %v222_v39  ;;  %832 = vmatprep.mubr.msk.f32.mxu1 %vm256_vm1, %v254_v38 }
  0xcf   : > { %v255_v40 = vpop.trf.xlu1  ;;  %v223_v41 = vpop.trf.xlu0 }
  0xd0   : > { %809 = vmatmul.mubr.msk.f32.gmra.mrb[14].mxu0 %vm256_vm1, %v223_v41  ;;  %833 = vmatmul.mubr.msk.f32.gmra.mrb[14].mxu1 %vm256_vm1, %v255_v40 }
 0x16b   : > { %v789_v42 = vpop.f32.mrb[0].mxu0  ;;  %v813_v43 = vpop.f32.mrb[0].mxu1 }
 0x16c   : > { %584 = vst.msk [vmem:[%s977_s26 + $0x8] sm:$0xff] %vm582_vm2, %v789_v42  ;;  %600 = vst.msk [vmem:[%s977_s26 + $0x88] sm:$0xff] %vm582_vm2, %v813_v43  ;;  %v423_v44 = vpop.f32.mrb[1].mxu0  ;;  %v503_v45 = vpop.f32.mrb[1].mxu1 }
 0x16d   : > { %583 = vst.msk [vmem:[%s977_s26] sm:$0xff] %vm582_vm2, %v423_v44  ;;  %599 = vst.msk [vmem:[%s977_s26 + $0x80] sm:$0xff] %vm582_vm2, %v503_v45 }
 0x173   : > { %v792_v46 = vpop.f32.mrb[2].mxu0  ;;  %v816_v47 = vpop.f32.mrb[2].mxu1 }
 0x174   : > { %586 = vst.msk [vmem:[%s977_s26 + $0x18] sm:$0xff] %vm582_vm2, %v792_v46  ;;  %602 = vst.msk [vmem:[%s977_s26 + $0x98] sm:$0xff] %vm582_vm2, %v816_v47  ;;  %v433_v48 = vpop.f32.mrb[3].mxu0  ;;  %v513_v49 = vpop.f32.mrb[3].mxu1 }
 0x175   : > { %585 = vst.msk [vmem:[%s977_s26 + $0x10] sm:$0xff] %vm582_vm2, %v433_v48  ;;  %601 = vst.msk [vmem:[%s977_s26 + $0x90] sm:$0xff] %vm582_vm2, %v513_v49 }
 0x17b   : > { %v795_v50 = vpop.f32.mrb[4].mxu0  ;;  %v819_v51 = vpop.f32.mrb[4].mxu1 }
 0x17c   : > { %588 = vst.msk [vmem:[%s977_s26 + $0x28] sm:$0xff] %vm582_vm2, %v795_v50  ;;  %604 = vst.msk [vmem:[%s977_s26 + $0xa8] sm:$0xff] %vm582_vm2, %v819_v51  ;;  %v443_v52 = vpop.f32.mrb[5].mxu0  ;;  %v523_v53 = vpop.f32.mrb[5].mxu1 }
 0x17d   : > { %587 = vst.msk [vmem:[%s977_s26 + $0x20] sm:$0xff] %vm582_vm2, %v443_v52  ;;  %603 = vst.msk [vmem:[%s977_s26 + $0xa0] sm:$0xff] %vm582_vm2, %v523_v53 }
 0x183   : > { %v798_v54 = vpop.f32.mrb[6].mxu0  ;;  %v822_v55 = vpop.f32.mrb[6].mxu1 }
 0x184   : > { %590 = vst.msk [vmem:[%s977_s26 + $0x38] sm:$0xff] %vm582_vm2, %v798_v54  ;;  %606 = vst.msk [vmem:[%s977_s26 + $0xb8] sm:$0xff] %vm582_vm2, %v822_v55  ;;  %v453_v56 = vpop.f32.mrb[7].mxu0  ;;  %v533_v57 = vpop.f32.mrb[7].mxu1 }
 0x185   : > { %589 = vst.msk [vmem:[%s977_s26 + $0x30] sm:$0xff] %vm582_vm2, %v453_v56  ;;  %605 = vst.msk [vmem:[%s977_s26 + $0xb0] sm:$0xff] %vm582_vm2, %v533_v57 }
 0x18b   : > { %v801_v58 = vpop.f32.mrb[8].mxu0  ;;  %v825_v59 = vpop.f32.mrb[8].mxu1 }
 0x18c   : > { %592 = vst.msk [vmem:[%s977_s26 + $0x48] sm:$0xff] %vm582_vm2, %v801_v58  ;;  %608 = vst.msk [vmem:[%s977_s26 + $0xc8] sm:$0xff] %vm582_vm2, %v825_v59  ;;  %v463_v60 = vpop.f32.mrb[9].mxu0  ;;  %v543_v61 = vpop.f32.mrb[9].mxu1 }
 0x18d   : > { %591 = vst.msk [vmem:[%s977_s26 + $0x40] sm:$0xff] %vm582_vm2, %v463_v60  ;;  %607 = vst.msk [vmem:[%s977_s26 + $0xc0] sm:$0xff] %vm582_vm2, %v543_v61 }
 0x193   : > { %v804_v62 = vpop.f32.mrb[10].mxu0  ;;  %v828_v63 = vpop.f32.mrb[10].mxu1 }
 0x194   : > { %594 = vst.msk [vmem:[%s977_s26 + $0x58] sm:$0xff] %vm582_vm2, %v804_v62  ;;  %610 = vst.msk [vmem:[%s977_s26 + $0xd8] sm:$0xff] %vm582_vm2, %v828_v63  ;;  %v473_v0 = vpop.f32.mrb[11].mxu0  ;;  %v553_v1 = vpop.f32.mrb[11].mxu1 }
 0x195   : > { %593 = vst.msk [vmem:[%s977_s26 + $0x50] sm:$0xff] %vm582_vm2, %v473_v0  ;;  %609 = vst.msk [vmem:[%s977_s26 + $0xd0] sm:$0xff] %vm582_vm2, %v553_v1 }
 0x19b   : > { %v807_v2 = vpop.f32.mrb[12].mxu0  ;;  %v831_v3 = vpop.f32.mrb[12].mxu1 }
 0x19c   : > { %596 = vst.msk [vmem:[%s977_s26 + $0x68] sm:$0xff] %vm582_vm2, %v807_v2  ;;  %612 = vst.msk [vmem:[%s977_s26 + $0xe8] sm:$0xff] %vm582_vm2, %v831_v3  ;;  %v483_v4 = vpop.f32.mrb[13].mxu0  ;;  %v563_v5 = vpop.f32.mrb[13].mxu1 }
 0x19d   : > { %595 = vst.msk [vmem:[%s977_s26 + $0x60] sm:$0xff] %vm582_vm2, %v483_v4  ;;  %611 = vst.msk [vmem:[%s977_s26 + $0xe0] sm:$0xff] %vm582_vm2, %v563_v5 }
 0x1a3   : > { %v810_v6 = vpop.f32.mrb[14].mxu0  ;;  %v834_v7 = vpop.f32.mrb[14].mxu1 }
 0x1a4   : > { %598 = vst.msk [vmem:[%s977_s26 + $0x78] sm:$0xff] %vm582_vm2, %v810_v6  ;;  %614 = vst.msk [vmem:[%s977_s26 + $0xf8] sm:$0xff] %vm582_vm2, %v834_v7  ;;  %v493_v8 = vpop.f32.mrb[15].mxu0  ;;  %v573_v9 = vpop.f32.mrb[15].mxu1 }
 0x1a5   : > { %597 = vst.msk [vmem:[%s977_s26 + $0x70] sm:$0xff] %vm582_vm2, %v493_v8  ;;  %613 = vst.msk [vmem:[%s977_s26 + $0xf0] sm:$0xff] %vm582_vm2, %v573_v9 }
 0x1a6 PF: > { %s12_s11 = sadd.s32 1, %s891_s11   ;;  %s1055_s9 = smov %s887_s10 }
 0x1a7   : > { %p9_p5 = scmp.ge.s32.totalorder %s12_s11, 6   ;;  %s1056_s10 = smov %s1058_s12 }
 0x1a9   :  { %11 = sbr.rel (!%p9_p5) target bundleno = 2 (0x2), region = 58 }

</bundles_post_ra>
